<compile_context>
chip_gen: v6e
topology: v6e:2x2x1
jax: 0.10.0
libtpu: 0.0.40
codegen_flags: <defaults>
</compile_context>

<pallas_src>
import functools

import jax
import jax.numpy as jnp
from jax import lax
from jax.experimental import pallas as pl
from jax.experimental.pallas import tpu as pltpu


_MASK_VALUE = -1e30  # large finite negative; avoids NaN on fully-masked rows


def _attend(q, k, v, scale, mask, *, exact_recip, mxu_dtype):
    """Tile-level attention math. q:(TQ,D) k:(L_k,D) v:(L_k,D_v)."""
    # Scale the small q tile (TQ x D) instead of the (TQ x L_k) scores tile.
    if scale is not None:
        q = q * jnp.asarray(scale, dtype=q.dtype)

    # Feed the MXU bf16 operands (f32 accumulation via preferred_element_type).
    if mxu_dtype is not None:
        if q.dtype == jnp.float32:
            q = q.astype(mxu_dtype)
        if k.dtype == jnp.float32:
            k = k.astype(mxu_dtype)

    # scores = q @ k^T, contracting the last dims (no explicit K transpose).
    scores = lax.dot_general(
        q, k,
        dimension_numbers=(((1,), (1,)), ((), ())),
        preferred_element_type=jnp.float32)                 # (TQ, L_k) f32

    if mask is not None:
        scores = jnp.where(mask, _MASK_VALUE, scores)       # broadcasts (1,L_k)

    # Numerically stable softmax over the key axis.
    m = jnp.max(scores, axis=-1, keepdims=True)
    e = jnp.exp(scores - m)
    s = jnp.sum(e, axis=-1, keepdims=True)
    if exact_recip:
        inv = 1.0 / s                                       # exact: rows sum to 1
    else:
        inv = pl.reciprocal(s, approx=True)                 # EUP slot, context-only
    attn = e * inv

    # context = attention @ v  (bf16 MXU feed, f32 accumulation)
    pv_dtype = v.dtype
    if mxu_dtype is not None and v.dtype == jnp.float32:
        pv_dtype = mxu_dtype
    ctx = jnp.dot(attn.astype(pv_dtype), v.astype(pv_dtype),
                  preferred_element_type=jnp.float32)
    return ctx, attn


def _make_sdpa_kernel(*, scale, has_mask, return_attention, mxu_dtype):
    def kernel(*refs):
        it = iter(refs)
        q_ref = next(it)
        k_ref = next(it)
        v_ref = next(it)
        mask = None
        if has_mask:
            mval = next(it)[...]
            mask = mval if mval.dtype == jnp.bool_ else (mval != 0)
        ctx_ref = next(it)
        attn_ref = next(it) if return_attention else None

        ctx, attn = _attend(q_ref[...], k_ref[...], v_ref[...], scale, mask,
                            exact_recip=return_attention, mxu_dtype=mxu_dtype)
        ctx_ref[...] = ctx.astype(ctx_ref.dtype)
        if attn_ref is not None:
            attn_ref[...] = attn.astype(attn_ref.dtype)
    return kernel


def scaled_dot_product_attention(q, k, v, scale=None, attn_mask=None, *,
                                 return_attention=True,
                                 attn_dtype=jnp.bfloat16,
                                 mxu_dtype=jnp.bfloat16,
                                 block_q=256,
                                 vmem_limit_bytes=48 * 1024 * 1024):
    """Pallas implementation of ScaledDotProductAttention.forward.

    q: (B, L_q, D), k: (B, L_k, D), v: (B, L_k, D_v)
    attn_mask: optional (B, L_q, L_k) or key-padding (B, 1, L_k), bool/int
               (True/nonzero => masked).
    return_attention: when False, only the context is computed/returned
               (drops the dominant (B, L_q, L_k) HBM writeback entirely).
    attn_dtype: dtype of the returned attention matrix (bf16 default).
    mxu_dtype: dtype f32 operands are cast to before MXU matmuls (None => f32).
    block_q: q-tile size. Keep <= 256 on v7x (64 MiB VMEM); on v6e/v5e it can
             be raised to 512 for L_k <= 2048 together with a larger
             vmem_limit_bytes (e.g. 64-96 MiB).
    Returns: (context, attention) or just context if return_attention=False.
    """
    B, L_q, D = q.shape
    _, L_k, _ = k.shape
    D_v = v.shape[-1]

    tq = min(block_q, L_q)
    grid = (B, pl.cdiv(L_q, tq))

    if scale is not None:           # `is not None`, so scale=0.0 is kept
        scale = float(scale)

    # Leading batch dim is squeezed (None) -> kernel refs are clean 2-D tiles.
    # K/V block indices depend only on b, so they stay resident across the
    # q-tile axis (no re-DMA per q tile).
    in_specs = [
        pl.BlockSpec((None, tq, D), lambda b, i: (b, i, 0)),
        pl.BlockSpec((None, L_k, D), lambda b, i: (b, 0, 0)),
        pl.BlockSpec((None, L_k, D_v), lambda b, i: (b, 0, 0)),
    ]
    operands = [q, k, v]

    has_mask = attn_mask is not None
    mask_bytes = 0
    if has_mask:
        if (attn_mask.ndim != 3 or attn_mask.shape[0] != B
                or attn_mask.shape[-1] != L_k
                or attn_mask.shape[1] not in (1, L_q)):
            raise ValueError(
                f"attn_mask must be (B, L_q, L_k) or (B, 1, L_k); got "
                f"{attn_mask.shape}")
        # Only cast when wider than 8 bits; bool/int8 go straight through
        # (no redundant full-tensor XLA copy before the kernel).
        if attn_mask.dtype.itemsize > 1:
            attn_mask = attn_mask.astype(jnp.int8)
        if attn_mask.shape[1] == 1:
            # Compact key-padding mask, broadcast inside the kernel.
            in_specs.append(pl.BlockSpec((None, 1, L_k), lambda b, i: (b, 0, 0)))
        else:
            in_specs.append(pl.BlockSpec((None, tq, L_k), lambda b, i: (b, i, 0)))
        operands.append(attn_mask)
        mask_bytes = attn_mask.size * attn_mask.dtype.itemsize

    ctx_spec = pl.BlockSpec((None, tq, D_v), lambda b, i: (b, i, 0))
    ctx_shape = jax.ShapeDtypeStruct((B, L_q, D_v), q.dtype)
    if return_attention:
        out_specs = (ctx_spec,
                     pl.BlockSpec((None, tq, L_k), lambda b, i: (b, i, 0)))
        out_shape = (ctx_shape,
                     jax.ShapeDtypeStruct((B, L_q, L_k), attn_dtype))
    else:
        out_specs = ctx_spec
        out_shape = ctx_shape

    # Advisory cost estimate for XLA's scheduler around the custom call.
    flops = 2 * B * L_q * L_k * (D + D_v)
    transcendentals = B * L_q * L_k
    bytes_accessed = (q.size * q.dtype.itemsize
                      + k.size * k.dtype.itemsize
                      + v.size * v.dtype.itemsize
                      + mask_bytes
                      + B * L_q * D_v * jnp.dtype(q.dtype).itemsize)
    if return_attention:
        bytes_accessed += B * L_q * L_k * jnp.dtype(attn_dtype).itemsize
    cost = pl.CostEstimate(flops=int(flops),
                           transcendentals=int(transcendentals),
                           bytes_accessed=int(bytes_accessed))

    grid_spec = pltpu.PrefetchScalarGridSpec(
        num_scalar_prefetch=0, grid=grid,
        in_specs=in_specs, out_specs=out_specs)

    kernel = _make_sdpa_kernel(scale=scale, has_mask=has_mask,
                               return_attention=return_attention,
                               mxu_dtype=mxu_dtype)

    result = pl.pallas_call(
        kernel,
        out_shape=out_shape,
        grid_spec=grid_spec,
        compiler_params=pltpu.CompilerParams(
            dimension_semantics=("parallel", "parallel"),
            vmem_limit_bytes=vmem_limit_bytes),
        cost_estimate=cost,
    )(*operands)

    if return_attention:
        context, attention = result
        return context, attention
    return result


# TODO(synk): the surrounding Encoder pieces (embedding lookup, positional
# encoding, linear projections, LayerNorm, position-wise FFN) are standard
# dense XLA ops and are not re-implemented as Pallas kernels here; only the
# scaled-dot-product-attention hot path is kernelized.


if __name__ == "__main__":
    key = jax.random.PRNGKey(0)
    B, L_q, L_k, D = 2, 8, 8, 32

    kq, kk, kv = jax.random.split(key, 3)
    q = jax.random.normal(kq, (B, L_q, D), dtype=jnp.float32)
    k = jax.random.normal(kk, (B, L_k, D), dtype=jnp.float32)
    v = jax.random.normal(kv, (B, L_k, D), dtype=jnp.float32)

    # Deterministic key-padding mask (like Encoder's padding_mask): for batch b
    # key positions >= lens[b] are masked.  Built as int8 so it passes through
    # the wrapper without any cast; never a fully-masked row.
    lens = jnp.array([L_k, L_k - 2], dtype=jnp.int32)
    kp_mask = (jnp.arange(L_k)[None, None, :]
               >= lens[:, None, None]).astype(jnp.int8)          # (B, 1, L_k)
    full_mask = jnp.broadcast_to(kp_mask, (B, L_q, L_k))          # (B, L_q, L_k)

    scale = 1.0 / (D ** 0.5)

    # Full-mask path.
    ctx_full, attn_full = scaled_dot_product_attention(
        q, k, v, scale=scale, attn_mask=full_mask)
    # Compact key-padding mask path (mask broadcast inside the kernel).
    ctx_kp, attn_kp = scaled_dot_product_attention(
        q, k, v, scale=scale, attn_mask=kp_mask)
    # No-mask path.
    ctx_nm, attn_nm = scaled_dot_product_attention(q, k, v, scale=scale)
    # Context-only fast path (no attention writeback at all).
    ctx_only = scaled_dot_product_attention(
        q, k, v, scale=scale, attn_mask=kp_mask, return_attention=False)

    jax.block_until_ready(
        (ctx_full, attn_full, ctx_kp, attn_kp, ctx_nm, attn_nm, ctx_only))

    # Reference in plain JAX (same math as the PyTorch forward; uses the same
    # finite mask fill the kernel uses instead of -inf).
    def ref(q, k, v, scale, mask):
        s = jnp.einsum("bqd,bkd->bqk", q, k)
        if scale is not None:
            s = s * scale
        if mask is not None:
            s = jnp.where(mask != 0, _MASK_VALUE, s)
        a = jax.nn.softmax(s, axis=-1)
        return jnp.einsum("bqk,bkd->bqd", a, v), a

    ctx_ref_m, attn_ref_m = ref(q, k, v, scale, full_mask)
    ctx_ref_n, attn_ref_n = ref(q, k, v, scale, None)

    # Tolerance accounts for bf16 MXU feeds and the bf16 attention output.
    tol = dict(atol=2e-2, rtol=2e-2)
    assert jnp.allclose(ctx_full, ctx_ref_m, **tol)
    assert jnp.allclose(attn_full.astype(jnp.float32), attn_ref_m, **tol)
    assert jnp.allclose(ctx_kp, ctx_ref_m, **tol)
    assert jnp.allclose(attn_kp.astype(jnp.float32), attn_ref_m, **tol)
    assert jnp.allclose(ctx_nm, ctx_ref_n, **tol)
    assert jnp.allclose(attn_nm.astype(jnp.float32), attn_ref_n, **tol)
    assert jnp.allclose(ctx_only, ctx_ref_m, **tol)
    # Returned attention uses an exact reciprocal -> rows sum to ~1.
    assert jnp.allclose(jnp.sum(attn_kp.astype(jnp.float32), axis=-1), 1.0,
                        atol=1e-2)

    print("KERNEL_OK")
</pallas_src>

<mosaic_0001>
module attributes {stable_mosaic.version = 11 : i64} {
  func.func @kernel(%arg0: i32, %arg1: i32, %arg2: memref<1x8x32xf32, #tpu.memory_space<vmem>>, %arg3: memref<1x8x32xf32, #tpu.memory_space<vmem>>, %arg4: memref<1x8x32xf32, #tpu.memory_space<vmem>>, %arg5: memref<1x8x8xi8, #tpu.memory_space<vmem>>, %arg6: memref<1x8x32xf32, #tpu.memory_space<vmem>>, %arg7: memref<1x8x8xbf16, #tpu.memory_space<vmem>>) attributes {dimension_semantics = [#tpu.dimension_semantics<parallel>, #tpu.dimension_semantics<parallel>], iteration_bounds = array<i64: 2, 1>, scalar_prefetch = 0 : i64, scratch_operands = 0 : i64, tpu.core_type = #tpu.core_type<tc>, window_params = [{transform_indices = @transform_0, window_bounds = array<i64: 1, 8, 32>}, {transform_indices = @transform_1, window_bounds = array<i64: 1, 8, 32>}, {transform_indices = @transform_2, window_bounds = array<i64: 1, 8, 32>}, {transform_indices = @transform_3, window_bounds = array<i64: 1, 8, 8>}, {transform_indices = @transform_4, window_bounds = array<i64: 1, 8, 32>}, {transform_indices = @transform_5, window_bounds = array<i64: 1, 8, 8>}]} {
    %c0 = arith.constant 0 : index
    %c0_0 = arith.constant 0 : index
    %c0_1 = arith.constant 0 : index
    %0 = vector.load %arg5[%c0, %c0_0, %c0_1] : memref<1x8x8xi8, #tpu.memory_space<vmem>>, vector<1x8x8xi8>
    %1 = vector.shape_cast %0 : vector<1x8x8xi8> to vector<8x8xi8>
    %c0_i8 = arith.constant 0 : i8
    %2 = vector.broadcast %c0_i8 : i8 to vector<8x8xi8>
    %3 = arith.cmpi ne, %1, %2 : vector<8x8xi8>
    %c0_2 = arith.constant 0 : index
    %c0_3 = arith.constant 0 : index
    %c0_4 = arith.constant 0 : index
    %4 = vector.load %arg2[%c0_2, %c0_3, %c0_4] : memref<1x8x32xf32, #tpu.memory_space<vmem>>, vector<1x8x32xf32>
    %5 = vector.shape_cast %4 : vector<1x8x32xf32> to vector<8x32xf32>
    %c0_5 = arith.constant 0 : index
    %c0_6 = arith.constant 0 : index
    %c0_7 = arith.constant 0 : index
    %6 = vector.load %arg3[%c0_5, %c0_6, %c0_7] : memref<1x8x32xf32, #tpu.memory_space<vmem>>, vector<1x8x32xf32>
    %7 = vector.shape_cast %6 : vector<1x8x32xf32> to vector<8x32xf32>
    %c0_8 = arith.constant 0 : index
    %c0_9 = arith.constant 0 : index
    %c0_10 = arith.constant 0 : index
    %8 = vector.load %arg4[%c0_8, %c0_9, %c0_10] : memref<1x8x32xf32, #tpu.memory_space<vmem>>, vector<1x8x32xf32>
    %9 = vector.shape_cast %8 : vector<1x8x32xf32> to vector<8x32xf32>
    %cst = arith.constant 0.176776692 : f32
    %10 = vector.broadcast %cst : f32 to vector<8x32xf32>
    %11 = arith.mulf %5, %10 : vector<8x32xf32>
    %12 = arith.truncf %11 : vector<8x32xf32> to vector<8x32xbf16>
    %13 = arith.truncf %7 : vector<8x32xf32> to vector<8x32xbf16>
    %cst_11 = arith.constant dense<0.000000e+00> : vector<8x8xf32>
    %14 = tpu.matmul %12, %13, %cst_11 {dimension_numbers = #tpu.dot_dimension_numbers<[1], [1], [0], [0], [0, 0, 1, 0], [], []>} : vector<8x32xbf16>, vector<8x32xbf16>, vector<8x8xf32> -> vector<8x8xf32>
    %cst_12 = arith.constant -1.000000e+30 : f32
    %15 = vector.broadcast %cst_12 : f32 to vector<8x8xf32>
    %16 = arith.select %3, %15, %14 : vector<8x8xi1>, vector<8x8xf32>
    %cst_13 = arith.constant dense<0xFF800000> : vector<8xf32>
    %17 = vector.multi_reduction <maximumf>, %16, %cst_13 [1] : vector<8x8xf32> to vector<8xf32>
    %18 = vector.shape_cast %17 : vector<8xf32> to vector<8x1xf32>
    %19 = vector.broadcast %18 : vector<8x1xf32> to vector<8x8xf32>
    %20 = arith.subf %16, %19 : vector<8x8xf32>
    %21 = math.exp %20 : vector<8x8xf32>
    %cst_14 = arith.constant dense<0.000000e+00> : vector<8xf32>
    %22 = vector.multi_reduction <add>, %21, %cst_14 [1] : vector<8x8xf32> to vector<8xf32>
    %23 = vector.shape_cast %22 : vector<8xf32> to vector<8x1xf32>
    %cst_15 = arith.constant 1.000000e+00 : f32
    %24 = vector.broadcast %cst_15 : f32 to vector<8x1xf32>
    %25 = arith.divf %24, %23 : vector<8x1xf32>
    %26 = vector.broadcast %25 : vector<8x1xf32> to vector<8x8xf32>
    %27 = arith.mulf %21, %26 : vector<8x8xf32>
    %28 = arith.truncf %27 : vector<8x8xf32> to vector<8x8xbf16>
    %29 = arith.truncf %9 : vector<8x32xf32> to vector<8x32xbf16>
    %cst_16 = arith.constant dense<0.000000e+00> : vector<8x32xf32>
    %30 = tpu.matmul %28, %29, %cst_16 {dimension_numbers = #tpu.dot_dimension_numbers<[1], [0], [0], [1], [0, 0, 1, 1], [], []>} : vector<8x8xbf16>, vector<8x32xbf16>, vector<8x32xf32> -> vector<8x32xf32>
    %c0_17 = arith.constant 0 : index
    %c0_18 = arith.constant 0 : index
    %c0_19 = arith.constant 0 : index
    %31 = vector.load %arg6[%c0_17, %c0_18, %c0_19] : memref<1x8x32xf32, #tpu.memory_space<vmem>>, vector<1x8x32xf32>
    %32 = vector.shape_cast %31 : vector<1x8x32xf32> to vector<8x32xf32>
    %33 = vector.shape_cast %30 : vector<8x32xf32> to vector<1x8x32xf32>
    tpu.vector_store %arg6[%c0_17, %c0_18, %c0_19], %33 {strides = array<i32>} : memref<1x8x32xf32, #tpu.memory_space<vmem>>, vector<1x8x32xf32>,
    %34 = arith.truncf %27 : vector<8x8xf32> to vector<8x8xbf16>
    %c0_20 = arith.constant 0 : index
    %c0_21 = arith.constant 0 : index
    %c0_22 = arith.constant 0 : index
    %35 = vector.load %arg7[%c0_20, %c0_21, %c0_22] : memref<1x8x8xbf16, #tpu.memory_space<vmem>>, vector<1x8x8xbf16>
    %36 = vector.shape_cast %35 : vector<1x8x8xbf16> to vector<8x8xbf16>
    %37 = vector.shape_cast %34 : vector<8x8xbf16> to vector<1x8x8xbf16>
    tpu.vector_store %arg7[%c0_20, %c0_21, %c0_22], %37 {strides = array<i32>} : memref<1x8x8xbf16, #tpu.memory_space<vmem>>, vector<1x8x8xbf16>,
    return
  }
  func.func @transform_0(%arg0: i32, %arg1: i32) -> (i32, i32, i32) {
    %c0_i32 = arith.constant 0 : i32
    %c0_i32_0 = arith.constant 0 : i32
    return %arg0, %arg1, %c0_i32 : i32, i32, i32
  }
  func.func @transform_1(%arg0: i32, %arg1: i32) -> (i32, i32, i32) {
    %c0_i32 = arith.constant 0 : i32
    %c0_i32_0 = arith.constant 0 : i32
    %c0_i32_1 = arith.constant 0 : i32
    return %arg0, %c0_i32, %c0_i32_0 : i32, i32, i32
  }
  func.func @transform_2(%arg0: i32, %arg1: i32) -> (i32, i32, i32) {
    %c0_i32 = arith.constant 0 : i32
    %c0_i32_0 = arith.constant 0 : i32
    %c0_i32_1 = arith.constant 0 : i32
    return %arg0, %c0_i32, %c0_i32_0 : i32, i32, i32
  }
  func.func @transform_3(%arg0: i32, %arg1: i32) -> (i32, i32, i32) {
    %c0_i32 = arith.constant 0 : i32
    %c0_i32_0 = arith.constant 0 : i32
    return %arg0, %arg1, %c0_i32 : i32, i32, i32
  }
  func.func @transform_4(%arg0: i32, %arg1: i32) -> (i32, i32, i32) {
    %c0_i32 = arith.constant 0 : i32
    %c0_i32_0 = arith.constant 0 : i32
    return %arg0, %arg1, %c0_i32 : i32, i32, i32
  }
  func.func @transform_5(%arg0: i32, %arg1: i32) -> (i32, i32, i32) {
    %c0_i32 = arith.constant 0 : i32
    %c0_i32_0 = arith.constant 0 : i32
    return %arg0, %arg1, %c0_i32 : i32, i32, i32
  }
}

</mosaic_0001>

<bundles_post_ra>
// kernel: tpu_custom_call.1
= control target key start
LH: loop header
LB: loop body
LE: loop exit
PB: predicated region body
PF: predicated region fallthrough
CT: control target
= control target key end

     0   :  { %s1303_s0 = inlined_call_operand.hbm [shape: f32[2,8,32], index: 0, kind: input, shape index: {}]   ;;  %s1304_s1 = inlined_call_operand.hbm [shape: f32[2,8,32], index: 1, kind: input, shape index: {}]   ;;  %s1305_s2 = inlined_call_operand.hbm [shape: f32[2,8,32], index: 2, kind: input, shape index: {}]   ;;  %s1306_s3 = inlined_call_operand.vmem [shape: s8[2,8,8], index: 3, kind: input, shape index: {}]   ;;  %s1307_s4 = inlined_call_operand.hbm [shape: f32[2,8,32], index: 4, kind: output, shape index: {0}]   ;;  %s1308_s5 = inlined_call_operand.hbm [shape: bf16[2,8,8], index: 5, kind: output, shape index: {1}]  }
   0x1   :  { %1314 = sst [smem:[#allocation19_spill]] %s1304_s1 }
   0x2   :  { %11 = vsyncpa [#allocation3], 0 }
   0x3   :  { %13 = vsyncpa [#allocation3 + $0x1], 0 }
   0x4   :  { %14 = vsyncpa [#allocation6], 0 }
   0x5   :  { %16 = vsyncpa [#allocation6 + $0x1], 0 }
   0x6   :  { %17 = vsyncpa [#allocation4], 0 }
   0x7   :  { %19 = vsyncpa [#allocation4 + $0x1], 0 }
   0x8   :  { %20 = vsyncpa [#allocation10], 0 }
   0x9   :  { %22 = vsyncpa [#allocation10 + $0x1], 0  ;;  %s1064_s18 = smov 0   ;;  %s1066_s19 = smov 0  }
   0xa   :  { %s1068_s20 = smov 0   ;;  %s1070_s21 = smov 0  }
   0xb   :  { %s1072_s22 = smov 0   ;;  %s1074_s23 = smov 0  }
   0xc LB: > { %1315 = sst [smem:[#allocation15_spill]] %s1020_s22  ;;  %s1095_s24 = sadd.s32 4294967295, %s1024_s23   ;;  %s1024_s23 = sphi %s1074_s23, %s28_s23   ;;  %s1020_s22 = sphi %s1072_s22, %s1331_s22   ;;  %s1016_s21 = sphi %s1070_s21, %s1330_s21   ;;  %s1012_s20 = sphi %s1068_s20, %s1334_s20   ;;  %s1008_s19 = sphi %s1066_s19, %s1333_s19   ;;  %s1004_s18 = sphi %s1064_s18, %s1332_s18  }
   0xd   : > { %1316 = sst [smem:[#allocation16_spill]] %s1024_s23  ;;  %s702_s25 = sadd.s32 4294967294, %s1024_s23  }
   0xe   : > { %s40_s26 = sadd.s32 1, %s1020_s22  ;;  %s49_s27 = sadd.s32 1, %s1012_s20 }
   0xf   : > { %p42_p0 = scmp.ge.s32.totalorder %s40_s26, 2  ;;  %p56_p1 = scmp.ne.s32.totalorder %s1012_s20, %s1008_s19 }
  0x10   : > { %p57_p2 = scmp.eq.s32.totalorder %s1024_s23, 0  ;;  %p62_p3 = scmp.ne.s32.totalorder %s1008_s19, %s1004_s18 }
  0x11   : > { %s1336_s26 = smov (%p42_p0, %s40_s26), 0  ;;  %p63_p5 = scmp.eq.s32.totalorder %s1095_s24, 0 }
  0x12   : > { %1317 = sst [smem:[#allocation17_spill]] %s1336_s26  ;;  %p1107_p4 = por %p57_p2, %p56_p1 }
  0x13   : > { %s44_s29 = ssub.s32 %s1020_s22, %s1336_s26  ;;  %p168_p6 = scmp.eq.s32.totalorder %s1095_s24, 1 }
  0x14   : > { %p47_p7 = scmp.eq.s32.totalorder %s44_s29, 0  ;;  %p1115_p8 = por %p63_p5, %p62_p3 }
  0x15   : > { %p1119_p9 = por %p168_p6, %p56_p1  ;;  %p174_p10 = scmp.eq.s32.totalorder %s702_s25, 1 }
  0x16   : > { %s1124_s7 = scalar_select %p47_p7, %s1012_s20, %s49_s27  }
  0x17   : > { %p1126_p11 = por %p174_p10, %p62_p3  ;;  %p769_p13 = scmp.lt.s32.totalorder %s1024_s23, 2 }
  0x18   : > { %1321 = sst [smem:[#allocation18_spill]] %s1124_s7  ;;  %s1309_s9 = sand.u32 1, %s1012_s20  }
  0x19   : > { %s1135_s10 = sshll.u32 %s1309_s9, 3  ;;  %s1138_s11 = sshll.u32 %s1020_s22, 7 }
  0x1a   : > { %p1142_p0 = pnand %p769_p13, %p1107_p4  ;;  %s241_s13 = sand.u32 1, %s1024_s23  }
  0x1b   : > { %s1324_s1 = sld [smem:[#allocation19_spill]]  ;;  %s245_s17 = scalar_lea.vmem [#allocation5], %s1135_s10 }
  0x1c   : > { %s252_s25 = sshll.u32 %s245_s17, 4  ;;  %p711_p1 = scmp.ge.s32.totalorder %s1024_s23, 1  ;;  %s253_s25 = int_to_ptr.vmem [resolvable:$true] %s252_s25 }
  0x1d   : > { %p285_p2 = scmp.lt.s32.totalorder %s1024_s23, 3  ;;  %s1154_s27 = scalar_lea.sflag [#allocation6], %s241_s13 }
  0x1e   : > { %p828_p3 = pneg %p1142_p0  ;;  %s839_s28 = scalar_lea.vmem %s253_s25, 128 }
  0x1f   : > { %p840_p4 = scmp.ne.s32.totalorder %s253_s25, %s839_s28  ;;  %s1026_s29 = smov [#allocation5]  }
  0x20   : > { %s844_s9 = sshll.u32 %s1026_s29, 4  ;;  %s845_s9 = int_to_ptr.vmem [resolvable:$false] %s844_s9 }
  0x21   : > { %s250_s16 = scalar_lea.hbm %s1324_s1, %s1138_s11  ;;  %p842_p5 = pnand %p840_p4, %p828_p3 }
  0x22   : > { %s846_s14 = scalar_lea.vmem %s845_s9, 256  ;;  %p847_p7 = scmp.lt.s32.totalorder %s253_s25, %s845_s9 }
  0x23   : > { %p843_p6 = pneg %p842_p5  ;;  %p848_p10 = scmp.lt.s32.totalorder %s846_s14, %s839_s28 }
  0x25   : > { %p849_p13 = por %p848_p10, %p847_p7 }
  0x27   : > { %p850_p12 = pnand %p849_p13, %p843_p6 }
  0x29   : > { %853 = shalt.err (!%p850_p12)
}
  0x2a   : > { %758 = dma.hbm_to_vmem [thread:$0]  (!%p1142_p0), %s250_s16, 128, %s253_s25, %s1154_s27  }
  0x2b   : > { %p1168_p4 = pnand %p711_p1, %p285_p2  ;;  %s232_s17 = scalar_lea.hbm %s1303_s0, %s1138_s11 }
  0x2c   : > { %s226_s28 = scalar_lea.vmem [#allocation2], %s1135_s10  ;;  %s268_s26 = scalar_lea.hbm %s1305_s2, %s1138_s11 }
  0x2d   : > { %s234_s29 = sshll.u32 %s226_s28, 4  ;;  %s1326_s22 = sand.u32 1, %s1012_s20   ;;  %s235_s29 = int_to_ptr.vmem [resolvable:$true] %s234_s29 }
  0x2e   : > { %s223_s7 = scalar_lea.sflag [#allocation3], %s1326_s22  ;;  %s867_s16 = scalar_lea.vmem %s235_s29, 128 }
  0x2f   : > { %p868_p12 = scmp.ne.s32.totalorder %s235_s29, %s867_s16  ;;  %s1027_s25 = smov [#allocation2]  }
  0x30   : > { %s872_s23 = sshll.u32 %s1027_s25, 4  ;;  %s873_s23 = int_to_ptr.vmem [resolvable:$false] %s872_s23 }
  0x31   : > { %p870_p1 = pnand %p868_p12, %p828_p3  ;;  %s874_s9 = scalar_lea.vmem %s873_s23, 256 }
  0x32   : > { %p875_p5 = scmp.lt.s32.totalorder %s235_s29, %s873_s23  ;;  %p876_p6 = scmp.lt.s32.totalorder %s874_s9, %s867_s16 }
  0x33   : > { %p871_p2 = pneg %p870_p1 }
  0x34   : > { %p877_p7 = por %p876_p6, %p875_p5 }
  0x36   : > { %p878_p10 = pnand %p877_p7, %p871_p2 }
  0x38   : > { %881 = shalt.err (!%p878_p10)
}
  0x39   : > { %755 = dma.hbm_to_vmem [thread:$0]  (!%p1142_p0), %s232_s17, 128, %s235_s29, %s223_s7  }
  0x3a   : > { %s263_s1 = scalar_lea.vmem [#allocation7], %s1135_s10  ;;  %s1028_s28 = smov [#allocation7]  }
  0x3b   : > { %s270_s22 = sshll.u32 %s263_s1, 4  ;;  %s900_s23 = sshll.u32 %s1028_s28, 4  ;;  %s271_s22 = int_to_ptr.vmem [resolvable:$true] %s270_s22  ;;  %s901_s23 = int_to_ptr.vmem [resolvable:$false] %s900_s23 }
  0x3c   : > { %s895_s15 = scalar_lea.vmem %s271_s22, 128  ;;  %s902_s14 = scalar_lea.vmem %s901_s23, 256 }
  0x3d   : > { %p896_p13 = scmp.ne.s32.totalorder %s271_s22, %s895_s15  ;;  %p903_p2 = scmp.lt.s32.totalorder %s271_s22, %s901_s23 }
  0x3e   : > { %p904_p5 = scmp.lt.s32.totalorder %s902_s14, %s895_s15 }
  0x3f   : > { %p898_p12 = pnand %p896_p13, %p828_p3 }
  0x40   : > { %p905_p6 = por %p904_p5, %p903_p2 }
  0x41   : > { %p899_p1 = pneg %p898_p12 }
  0x43   : > { %p906_p7 = pnand %p905_p6, %p899_p1 }
  0x45   : > { %909 = shalt.err (!%p906_p7)
}
  0x46   : > { %761 = dma.hbm_to_vmem [thread:$0]  (!%p1142_p0), %s268_s26, 128, %s271_s22, %s1154_s27  }
  0x47   : > { %289 = sbr.rel (%p1168_p4) target bundleno = 808 (0x328), region = 36  ;;  %s1203_s17 = sand.u32 (!%p1168_p4), 1, %s1008_s19  }
  0x48   : > { %s1206_s29 = sshll.u32 (!%p1168_p4), %s1203_s17, 3  ;;  %s292_s12 = scalar_lea.sflag (!%p1168_p4), [#allocation3], %s1203_s17 }
  0x49   : > { %s295_s16 = scalar_lea.vmem (!%p1168_p4), [#allocation2], %s1206_s29 }
  0x4c   : > { %987 = dma.done.wait (%p1115_p8), %s292_s12, 128  }
  0x4d   : > { %989 = vsyncadd (%p1115_p8), %s292_s12, 4294967168  ;;  %s300_s26 = sand.u32 1, %s1095_s24   ;;  %s304_s27 = scalar_lea.vmem [#allocation5], %s1206_s29 }
  0x4e   : > { %s301_s11 = scalar_lea.sflag [#allocation6], %s300_s26 }
  0x4f   : > { %991 = dma.done.wait (%p1115_p8), %s301_s11, 256  }
  0x50   : > { %993 = vsyncadd (%p1115_p8), %s301_s11, 4294967040  ;;  %v1029_v0 = vmov 0.0   ;;  %vm1030_vm0 = vmmov 0   ;;  %v375_v1 = vld [vmem:[%s304_s27] sm:$0xff]  ;;  %vm380_vm1 = vcmask 261120   ;;  %v374_v2 = vld [vmem:[%s295_s16] sm:$0xff] }
  0x51   : > { %730 = vmatprep.subr.bf16.mxu0 %v1029_v0  ;;  %732 = vmatprep.mubr.msk.bf16.mxu0 %vm1030_vm0, %v1029_v0  ;;  %v379_v3 = vpack.c.bf16 %v375_v1, %v375_v1  ;;  %v377_v5 = vmul.f32 0.17677669, %v374_v2  ;;  %p362_p8 = scmp.lt.s32.totalorder %s1016_s21, 1  ;;  %v1031_v8 = vmov 0   ;;  %vm431_vm4 = vcmask 64512   ;;  %s313_s1 = scalar_lea.vmem [#allocation7], %s1206_s29 }
  0x52   : > { %736 = vmatprep.subr.bf16.mxu1 %v1029_v0  ;;  %738 = vmatprep.mubr.msk.bf16.mxu1 %vm1030_vm0, %v1029_v0  ;;  %v376_v22 = vld [vmem:[%s313_s1] sm:$0xff]  ;;  %vm449_vm5 = vcmask 1043456   ;;  %s716_s22 = sshll.u32 %s1203_s17, 2  ;;  %vm494_vm6 = vcmask 60416   ;;  %s723_s28 = sshll.u32 %s1016_s21, 6 }
  0x53   : > { %v385_v4 = vsel %vm380_vm1, %v379_v3, 0  ;;  %v378_v6 = vpack.c.bf16 %v377_v5, %v377_v5  ;;  %s363_s24 = scalar_select %p362_p8, %s1016_s21, 1  ;;  %v445_v23 = vpack.c.bf16 %v376_v22, %v376_v22 }
  0x54   : > { %731 = vmatpush3.bf16.xpose.msra.mxu0 %v385_v4  ;;  %s361_s15 = scalar_lea.vmem [#allocation9], %s716_s22  ;;  %s528_s10 = scalar_lea.hbm %s1308_s5, %s723_s28 }
  0x55   : > { %s717_s30 = sshll.u32 %s363_s24, 1  ;;  %v451_v24 = vsel %vm449_vm5, %v445_v23, 0  ;;  %s530_s23 = sshll.u32 %s361_s15, 4  ;;  %s531_s23 = int_to_ptr.vmem [resolvable:$true] %s530_s23 }
  0x56   : > { %s368_s9 = scalar_lea.vmem %s1306_s3, %s717_s30  ;;  %737 = vmatpush3.bf16.msra.mxu1 %v451_v24  ;;  %s502_s12 = scalar_lea.sflag [#allocation10], %s1203_s17 }
  0x57   : > { %v372_v7 = vld [vmem:[%s368_s9] sm:$0x3]  ;;  %s910_s16 = scalar_lea.vmem %s531_s23, 64  ;;  %s1032_s26 = smov [#allocation9]  }
  0x58   : > { %vm373_vm2 = vnez %v372_v7  ;;  %p911_p0 = scmp.ne.s32.totalorder %s531_s23, %s910_s16  ;;  %s914_s11 = sshll.u32 %s1032_s26, 4  ;;  %s915_s11 = int_to_ptr.vmem [resolvable:$false] %s914_s11 }
  0x59   : > { %v427_v9 = vsel %vm373_vm2, 16843009, %v1031_v8  ;;  %s916_s27 = scalar_lea.vmem %s915_s11, 128  ;;  %p917_p10 = scmp.lt.s32.totalorder %s531_s23, %s915_s11 }
  0x5a   : > { %v428_v10 = vunpack.c.0.s8 %v427_v9  ;;  %p912_p3 = pnand %p911_p0, %p1119_p9  ;;  %p918_p13 = scmp.lt.s32.totalorder %s916_s27, %s910_s16 }
  0x5b   : > { %733 = vmatmul.mubr.msk.bf16.vlgmr.msra.gmra.mxu0 %vm380_vm1, %v378_v6 }
  0x5c   : > { %vm429_vm3 = vcmp.ne.s32.totalorder %v428_v10, 0  ;;  %p913_p4 = pneg %p912_p3  ;;  %p919_p12 = por %p918_p13, %p917_p10 }
  0x5e   : > { %p920_p1 = pnand %p919_p12, %p913_p4 }
 0x11b   : > { %v421_v11 = vpop.f32.mrf.mxu0 }
 0x11c   : > { %v430_v12 = vsel %vm429_vm3, -1e+30, %v421_v11 }
 0x11d   : > { %v734_v13 = vpop.f32.mrf.mxu0  ;;  %v432_v14 = vsel %vm431_vm4, %v430_v12, -inf }
 0x11e   : > { %433 = vmax.xlane.f32.xlu0 %v432_v14 }
 0x11f   : > { %v424_v15 = vpop.f32.mrf.mxu0 }
 0x121   : > { %v735_v16 = vpop.f32.mrf.mxu0 }
 0x1a7   : > { %v434_v17 = vpop.xlane.xlu0 %433 }
 0x1a8   : > { %v435_v18 = vsub.f32 %v430_v12, %v434_v17 }
 0x1aa   : > { %v436_v19 = vmul.f32 1.442695, %v435_v18 }
 0x1ac   : > { %822 = vpow2.f32 %v436_v19 }
 0x1b9   : > { %v823_v20 = vpop.eup %822 }
 0x1ba   : > { %v438_v21 = vsel %vm431_vm4, %v823_v20, 0.0 }
 0x1bb   : > { %439 = vadd.xlane.f32.xlu0 %v438_v21 }
 0x244   : > { %v440_v25 = vpop.xlane.xlu0 %439 }
 0x245   : > { %824 = vrcp.f32 %v440_v25 }
 0x252   : > { %v825_v26 = vpop.eup %824 }
 0x253   : > { %v443_v27 = vmul.f32 %v825_v26, %v823_v20 }
 0x255   : > { %v444_v28 = vpack.c.bf16 %v443_v27, %v443_v27 }
 0x257   : > { %739 = vmatmul.mubr.msk.bf16.vlgmr.msra.gmra.mxu1 %vm431_vm4, %v444_v28  ;;  %495 = vst.msk [vmem:[%s361_s15] sm:$0xf] %vm494_vm6, %v444_v28 }
 0x258   : > { %923 = shalt.err (!%p920_p1)
}
 0x259   : > { %s924_s24 = scalar_lea.hbm %s528_s10, 64  ;;  %s928_s25 = scalar_lea.hbm %s1308_s5, 128 }
 0x25a   : > { %p925_p2 = scmp.ne.s32.totalorder %s528_s10, %s924_s24  ;;  %p929_p7 = scmp.lt.s32.totalorder %s528_s10, %s1308_s5 }
 0x25b   : > { %p930_p8 = scmp.lt.s32.totalorder %s928_s25, %s924_s24 }
 0x25c   : > { %p926_p5 = pnand %p925_p2, %p1119_p9 }
 0x25d   : > { %p931_p0 = por %p930_p8, %p929_p7 }
 0x25e   : > { %p927_p6 = pneg %p926_p5 }
 0x260   : > { %p932_p3 = pnand %p931_p0, %p927_p6 }
 0x262   : > { %935 = shalt.err (!%p932_p3)
}
 0x263   : > { %749 = dma.vmem_to_hbm [thread:$0]  (%p1119_p9), %s531_s23, 64, %s528_s10, %s502_s12  }
 0x264   : > { %s722_s22 = sshll.u32 %s1016_s21, 7  ;;  %s354_s15 = scalar_lea.vmem [#allocation8], %s1206_s29 }
 0x265   : > { %s516_s28 = sshll.u32 %s354_s15, 4  ;;  %s1254_s16 = scalar_lea.hbm %s1307_s4, %s722_s22  ;;  %s1256_s28 = int_to_ptr.vmem [resolvable:$true] %s516_s28 }
 0x266   : > { %s497_s26 = scalar_lea.sflag [#allocation4], %s1203_s17  ;;  %s936_s11 = scalar_lea.vmem %s1256_s28, 128 }
 0x267   : > { %p937_p4 = scmp.ne.s32.totalorder %s1256_s28, %s936_s11  ;;  %s1033_s21 = smov [#allocation8]  }
 0x268   : > { %s940_s29 = sshll.u32 %s1033_s21, 4  ;;  %s941_s29 = int_to_ptr.vmem [resolvable:$false] %s940_s29 }
 0x269   : > { %p938_p10 = pnand %p937_p4, %p1119_p9  ;;  %s942_s23 = scalar_lea.vmem %s941_s29, 256 }
 0x26a   : > { %p943_p12 = scmp.lt.s32.totalorder %s1256_s28, %s941_s29  ;;  %p944_p1 = scmp.lt.s32.totalorder %s942_s23, %s936_s11 }
 0x26b   : > { %p939_p13 = pneg %p938_p10 }
 0x26c   : > { %p945_p2 = por %p944_p1, %p943_p12 }
 0x26e   : > { %p946_p5 = pnand %p945_p2, %p939_p13 }
 0x317   : > { %v487_v29 = vpop.f32.mrf.mxu1 }
 0x318   : > { %493 = vst.msk [vmem:[%s354_s15] sm:$0xff] %vm380_vm1, %v487_v29 }
 0x319   : > { %v740_v30 = vpop.f32.mrf.mxu1 }
 0x31a   : > { %949 = shalt.err (!%p946_p5)
}
 0x31b   : > { %s950_s10 = scalar_lea.hbm %s1254_s16, 128  ;;  %s954_s27 = scalar_lea.hbm %s1307_s4, 256 }
 0x31c   : > { %p951_p6 = scmp.ne.s32.totalorder %s1254_s16, %s950_s10  ;;  %p955_p0 = scmp.lt.s32.totalorder %s1254_s16, %s1307_s4 }
 0x31d   : > { %p956_p3 = scmp.lt.s32.totalorder %s954_s27, %s950_s10 }
 0x31e   : > { %p952_p7 = pnand %p951_p6, %p1119_p9 }
 0x31f   : > { %p957_p4 = por %p956_p3, %p955_p0 }
 0x320   : > { %p953_p8 = pneg %p952_p7 }
 0x322   : > { %p958_p10 = pnand %p957_p4, %p953_p8 }
 0x324   : > { %961 = shalt.err (!%p958_p10)
}
 0x325   : > { %748 = dma.vmem_to_hbm [thread:$0]  (%p1119_p9), %s1256_s28, 128, %s1254_s16, %s497_s26   ;;  %v490_v31 = vpop.f32.mrf.mxu1 }
 0x327   : > { %v741_v32 = vpop.f32.mrf.mxu1 }
 0x328 PF: > { %s1327_s13 = sld [smem:[#allocation16_spill]]  ;;  %s542_s25 = sand.u32 1, %s1004_s18  }
 0x329   : > { %s543_s9 = scalar_lea.sflag [#allocation4], %s542_s25 }
 0x32e   : > { %p1328_p13 = scmp.ge.s32.totalorder %s1327_s13, 2 }
 0x330   : > { %p763_p12 = pnand %p1328_p13, %p1126_p11 }
 0x332   : > { %p764_p1 = pneg %p763_p12 }
 0x334   : > { %995 = dma.done.wait (%p764_p1), %s543_s9, 128  }
 0x335   : > { %997 = vsyncadd (%p764_p1), %s543_s9, 4294967168  ;;  %s552_s1 = scalar_lea.sflag [#allocation10], %s542_s25 }
 0x336   : > { %999 = dma.done.wait (%p764_p1), %s552_s1, 64  }
 0x337   : > { %1001 = vsyncadd (%p764_p1), %s552_s1, 4294967232  ;;  %s28_s23 = sadd.s32 1, %s1327_s13   ;;  %s1329_s6 = sld [smem:[#allocation18_spill]] }
 0x338   : > { %p25_p9 = scmp.ge.s32.totalorder %s28_s23, 4   ;;  %s1330_s21 = sld [smem:[#allocation15_spill]] }
 0x339   : > { %s1331_s22 = sld [smem:[#allocation17_spill]]  ;;  %s1332_s18 = smov %s1008_s19 }
 0x33a   : > { %s1333_s19 = smov %s1012_s20  ;;  %27 = sbr.rel (!%p25_p9) target bundleno = 12 (0xc), region = 125 }
 0x33d   : > { %s1334_s20 = smov %s1329_s6 }
 0x33f   :  { %557 = vsyncpa [#allocation3], 1 }
 0x340   :  { %559 = vsyncpa [#allocation3 + $0x1], 1 }
 0x341   :  { %560 = vsyncpa [#allocation6], 1 }
 0x342   :  { %562 = vsyncpa [#allocation6 + $0x1], 1 }
 0x343   :  { %563 = vsyncpa [#allocation4], 1 }
 0x344   :  { %565 = vsyncpa [#allocation4 + $0x1], 1 }
 0x345   :  { %566 = vsyncpa [#allocation10], 1 }
 0x346   :  { %568 = vsyncpa [#allocation10 + $0x1], 1 }

</bundles_post_ra>
